<compile_context>
chip_gen: v6e
topology: v6e:2x2x1
jax: 0.10.0
libtpu: 0.0.40
codegen_flags: <defaults>
</compile_context>

<pallas_src>
import jax
import jax.numpy as jnp
import numpy as np
from jax.experimental import pallas as pl
from jax.experimental.pallas import tpu as pltpu


# ----------------------------------------------------------------------------- kernel


def _koodos_fused_kernel(times_ref, x_ref, wb_ref, bb_ref, wp_ref, bp_ref,
                         init_param_ref, we_ref, be_ref, wd_ref, bd_ref, k_ref,
                         init_pred_ref, gene_pred_ref, init_embed_ref,
                         init_debed_ref, gene_param_ref, gene_embed_ref):
    """Entire Koodos forward with all intermediates resident in VMEM."""
    S, B, Din = x_ref.shape
    C, H = wp_ref.shape[1], wp_ref.shape[2]
    E = k_ref.shape[0]
    T = gene_embed_ref.shape[0]
    f32 = jnp.float32

    # ---- shared backbone: tanh(x @ Wb + bb).  Din is tiny -> VPU FMA, no MXU.
    x = x_ref[...]                                   # [S, B, Din]
    wb = wb_ref[...]                                 # [Din, H]
    acc = x[:, :, 0:1] * wb[0:1, :]                  # [S, B, H] via broadcast
    for d in range(1, Din):
        acc = acc + x[:, :, d:d + 1] * wb[d:d + 1, :]
    feat = jnp.tanh(acc + bb_ref[...])               # [S, B, H]

    # ---- encoder: init_embed = init_param @ We + be
    init_embed = (jnp.dot(init_param_ref[...], we_ref[...],
                          preferred_element_type=f32) + be_ref[...])       # [S, E]
    init_embed_ref[...] = init_embed

    # ---- linear-Koopman RK4.  One classical RK4 step over a linear ODE equals
    #      z <- z @ (I + A + A^2/2 + A^3/6 + A^4/24),  A = dt*K.
    #      A^n = dt^n * K^n, so K powers are hoisted out of the time loop.
    K = k_ref[...]                                   # [E, E]
    K2 = jnp.dot(K, K, preferred_element_type=f32)
    K3 = jnp.dot(K2, K, preferred_element_type=f32)
    K4 = jnp.dot(K2, K2, preferred_element_type=f32)
    ri = jax.lax.broadcasted_iota(jnp.int32, (E, E), 0)
    ci = jax.lax.broadcasted_iota(jnp.int32, (E, E), 1)
    eye = (ri == ci).astype(f32)

    z = init_embed[0:1, :]                           # [1, E]  (z(t0) = init_embed[0])
    zs = [z]
    for t in range(1, T):                            # static unroll, T is tiny
        dt = times_ref[t] - times_ref[t - 1]         # SMEM scalar reads
        dt2 = dt * dt
        M = (eye + dt * K + (0.5 * dt2) * K2
             + (dt2 * dt * (1.0 / 6.0)) * K3
             + (dt2 * dt2 * (1.0 / 24.0)) * K4)      # VPU only
        z = jnp.dot(z, M, preferred_element_type=f32)
        zs.append(z)
    gene_embed = jnp.concatenate(zs, axis=0)         # [T, E]
    gene_embed_ref[...] = gene_embed

    # ---- decoder on [gene_embed ; init_embed] in a single matmul
    both = jnp.concatenate([gene_embed, init_embed], axis=0)                # [T+S, E]
    dec = jnp.dot(both, wd_ref[...], preferred_element_type=f32) + bd_ref[...]
    gene_param = dec[0:T, :]                         # [T, P]
    gene_param_ref[...] = gene_param
    init_debed_ref[...] = dec[T:T + S, :]            # [S, P]

    # ---- heads: for each domain s, one fused matmul computes both the original
    #      predictive head (weights Wp[s]) and the generalized head (weights are
    #      the decoded gene_param[s], interpreted as Linear(H, C) in torch
    #      flatten order: rows c*H:(c+1)*H then bias).
    wp = wp_ref[...]                                 # [S, C, H] (torch layout)
    bp = bp_ref[...]                                 # [S, C]
    for s in range(S):                               # static unroll, S is tiny
        gene_rows = [gene_param[s:s + 1, c * H:(c + 1) * H] for c in range(C)]
        w_all = jnp.concatenate([wp[s]] + gene_rows, axis=0)                 # [2C, H]
        p_all = jnp.dot(feat[s], w_all.T, preferred_element_type=f32)        # [B, 2C]
        init_pred_ref[s] = p_all[:, 0:C] + bp[s:s + 1, :]
        gene_pred_ref[s] = p_all[:, C:2 * C] + gene_param[s:s + 1, C * H:C * H + C]


# ----------------------------------------------------------------------------- wrapper


def koodos_forward(X, continuous_time, Wb, bb, Wp, bp, We, be, Wd, bd, K):
    S, B, Din = X.shape
    C, H = Wp.shape[1], Wp.shape[2]
    E = We.shape[1]
    P = We.shape[0]
    T = continuous_time.shape[0]
    assert T == S, "continuous_time must have one entry per temporal domain"

    # torch param flattening order: weight.flatten() then bias, per domain
    init_param = jnp.concatenate([Wp.reshape(S, C * H), bp], axis=1)         # [S, P]

    smem = pl.BlockSpec(memory_space=pltpu.MemorySpace.SMEM)
    vmem = pl.BlockSpec(memory_space=pltpu.MemorySpace.VMEM)

    (init_pred, gene_pred, init_embed, init_debed,
     gene_param, gene_embed) = pl.pallas_call(
        _koodos_fused_kernel,
        out_shape=[
            jax.ShapeDtypeStruct((S, B, C), jnp.float32),   # init_pred
            jax.ShapeDtypeStruct((S, B, C), jnp.float32),   # gene_pred
            jax.ShapeDtypeStruct((S, E), jnp.float32),      # init_embed
            jax.ShapeDtypeStruct((S, P), jnp.float32),      # init_debed
            jax.ShapeDtypeStruct((T, P), jnp.float32),      # gene_param
            jax.ShapeDtypeStruct((T, E), jnp.float32),      # gene_embed
        ],
        in_specs=[smem] + [vmem] * 11,
        out_specs=[vmem] * 6,
    )(continuous_time, X, Wb, bb, Wp, bp, init_param, We, be, Wd, bd, K)

    # init_pred[i] / gene_pred[i] correspond to the torch list elements.
    return (init_pred, gene_pred, init_param, init_embed,
            init_debed, gene_param, gene_embed)


# ----------------------------------------------------------------------------- reference


def koodos_reference(X, t, Wb, bb, Wp, bp, We, be, Wd, bd, K):
    """Pure-JAX reference of the same forward (for a correctness spot-check)."""
    S, B, Din = X.shape
    C, H = Wp.shape[1], Wp.shape[2]
    E = K.shape[0]
    feat = jnp.tanh(X @ Wb + bb)                                        # [S,B,H]
    init_pred = jnp.einsum('sbh,sch->sbc', feat, Wp) + bp[:, None, :]
    init_param = jnp.concatenate([Wp.reshape(S, C * H), bp], axis=1)
    init_embed = init_param @ We + be
    eye = jnp.eye(E, dtype=jnp.float32)
    K2 = K @ K
    K3 = K2 @ K
    K4 = K2 @ K2
    z = init_embed[0]
    zs = [z]
    for i in range(1, S):
        dt = t[i] - t[i - 1]
        M = eye + dt * K + dt**2 / 2 * K2 + dt**3 / 6 * K3 + dt**4 / 24 * K4
        z = z @ M
        zs.append(z)
    gene_embed = jnp.stack(zs, axis=0)
    gene_param = gene_embed @ Wd + bd
    init_debed = init_embed @ Wd + bd
    gene_w = gene_param[:, :C * H].reshape(S, C, H)
    gene_b = gene_param[:, C * H:]
    gene_pred = jnp.einsum('sbh,sch->sbc', feat, gene_w) + gene_b[:, None, :]
    return (init_pred, gene_pred, init_param, init_embed,
            init_debed, gene_param, gene_embed)


# ----------------------------------------------------------------------------- main

if __name__ == "__main__":
    # Moons-style small shapes: 4 temporal domains, batch 8, 2-d inputs,
    # hidden 32, 2 classes, embedding dim 16.
    S, B, Din, H, C, E = 4, 8, 2, 32, 2, 16
    P = C * H + C

    key = jax.random.PRNGKey(0)
    ks = jax.random.split(key, 10)

    X = jax.random.normal(ks[0], (S, B, Din), jnp.float32)

    # shared backbone Linear(Din, H) (+tanh), stored [in, out]
    Wb = 0.3 * jax.random.normal(ks[1], (Din, H), jnp.float32)
    bb = 0.1 * jax.random.normal(ks[2], (1, H), jnp.float32)

    # per-domain predictive heads Linear(H, C), torch layout weight [C, H]
    Wp = 0.2 * jax.random.normal(ks[3], (S, C, H), jnp.float32)
    bp = 0.05 * jax.random.normal(ks[4], (S, C), jnp.float32)

    # encoder Linear(P, E) / decoder Linear(E, P), stored [in, out]
    We = 0.1 * jax.random.normal(ks[5], (P, E), jnp.float32)
    be = 0.02 * jax.random.normal(ks[6], (1, E), jnp.float32)
    Wd = 0.1 * jax.random.normal(ks[7], (E, P), jnp.float32)
    bd = 0.02 * jax.random.normal(ks[8], (1, P), jnp.float32)

    # ode_f: dz/dt = z @ K (linear Koopman operator, no bias)
    K = 0.05 * jax.random.normal(ks[9], (E, E), jnp.float32)

    # continuous_time spaced by rk_step => one exact RK4 step per interval
    continuous_time = jnp.arange(S, dtype=jnp.float32)

    # TODO(synk): dataset-specific sub-networks (model/{moon,mnist,...}.py) are not
    # available; the Moons configuration above is synthesized deterministically.
    fwd = jax.jit(koodos_forward)
    outs = fwd(X, continuous_time, Wb, bb, Wp, bp, We, be, Wd, bd, K)
    jax.block_until_ready(outs)

    refs = koodos_reference(X, continuous_time, Wb, bb, Wp, bp, We, be, Wd, bd, K)
    for o, r in zip(outs, refs):
        assert o.shape == r.shape
        assert np.allclose(np.asarray(o), np.asarray(r), rtol=1e-4, atol=1e-4)

    print("KERNEL_OK")
</pallas_src>

<mosaic_0001>
module attributes {stable_mosaic.version = 11 : i64} {
  func.func @_koodos_fused_kernel(%arg0: memref<4xf32, #tpu.memory_space<smem>>, %arg1: memref<4x8x2xf32, #tpu.memory_space<vmem>>, %arg2: memref<2x32xf32, #tpu.memory_space<vmem>>, %arg3: memref<1x32xf32, #tpu.memory_space<vmem>>, %arg4: memref<4x2x32xf32, #tpu.memory_space<vmem>>, %arg5: memref<4x2xf32, #tpu.memory_space<vmem>>, %arg6: memref<4x66xf32, #tpu.memory_space<vmem>>, %arg7: memref<66x16xf32, #tpu.memory_space<vmem>>, %arg8: memref<1x16xf32, #tpu.memory_space<vmem>>, %arg9: memref<16x66xf32, #tpu.memory_space<vmem>>, %arg10: memref<1x66xf32, #tpu.memory_space<vmem>>, %arg11: memref<16x16xf32, #tpu.memory_space<vmem>>, %arg12: memref<4x8x2xf32, #tpu.memory_space<vmem>>, %arg13: memref<4x8x2xf32, #tpu.memory_space<vmem>>, %arg14: memref<4x16xf32, #tpu.memory_space<vmem>>, %arg15: memref<4x66xf32, #tpu.memory_space<vmem>>, %arg16: memref<4x66xf32, #tpu.memory_space<vmem>>, %arg17: memref<4x16xf32, #tpu.memory_space<vmem>>) attributes {dimension_semantics = [], scalar_prefetch = 0 : i64, scratch_operands = 0 : i64, tpu.core_type = #tpu.core_type<tc>} {
    %c0 = arith.constant 0 : index
    %c0_0 = arith.constant 0 : index
    %c0_1 = arith.constant 0 : index
    %0 = vector.load %arg1[%c0, %c0_0, %c0_1] : memref<4x8x2xf32, #tpu.memory_space<vmem>>, vector<4x8x2xf32>
    %c0_2 = arith.constant 0 : index
    %c0_3 = arith.constant 0 : index
    %1 = vector.load %arg2[%c0_2, %c0_3] : memref<2x32xf32, #tpu.memory_space<vmem>>, vector<2x32xf32>
    %2 = vector.extract_strided_slice %0 {offsets = [0, 0, 0], sizes = [4, 8, 1], strides = [1, 1, 1]} : vector<4x8x2xf32> to vector<4x8x1xf32>
    %3 = vector.extract_strided_slice %1 {offsets = [0, 0], sizes = [1, 32], strides = [1, 1]} : vector<2x32xf32> to vector<1x32xf32>
    %4 = vector.shape_cast %3 : vector<1x32xf32> to vector<1x1x32xf32>
    %5 = vector.broadcast %2 : vector<4x8x1xf32> to vector<4x8x32xf32>
    %6 = vector.broadcast %4 : vector<1x1x32xf32> to vector<4x8x32xf32>
    %7 = arith.mulf %5, %6 : vector<4x8x32xf32>
    %8 = vector.extract_strided_slice %0 {offsets = [0, 0, 1], sizes = [4, 8, 1], strides = [1, 1, 1]} : vector<4x8x2xf32> to vector<4x8x1xf32>
    %9 = vector.extract_strided_slice %1 {offsets = [1, 0], sizes = [1, 32], strides = [1, 1]} : vector<2x32xf32> to vector<1x32xf32>
    %10 = vector.shape_cast %9 : vector<1x32xf32> to vector<1x1x32xf32>
    %11 = vector.broadcast %8 : vector<4x8x1xf32> to vector<4x8x32xf32>
    %12 = vector.broadcast %10 : vector<1x1x32xf32> to vector<4x8x32xf32>
    %13 = arith.mulf %11, %12 : vector<4x8x32xf32>
    %14 = arith.addf %7, %13 : vector<4x8x32xf32>
    %c0_4 = arith.constant 0 : index
    %c0_5 = arith.constant 0 : index
    %15 = vector.load %arg3[%c0_4, %c0_5] : memref<1x32xf32, #tpu.memory_space<vmem>>, vector<1x32xf32>
    %16 = vector.shape_cast %15 : vector<1x32xf32> to vector<1x1x32xf32>
    %17 = vector.broadcast %16 : vector<1x1x32xf32> to vector<4x8x32xf32>
    %18 = arith.addf %14, %17 : vector<4x8x32xf32>
    %19 = math.tanh %18 : vector<4x8x32xf32>
    %c0_6 = arith.constant 0 : index
    %c0_7 = arith.constant 0 : index
    %20 = vector.load %arg6[%c0_6, %c0_7] : memref<4x66xf32, #tpu.memory_space<vmem>>, vector<4x66xf32>
    %c0_8 = arith.constant 0 : index
    %c0_9 = arith.constant 0 : index
    %21 = vector.load %arg7[%c0_8, %c0_9] : memref<66x16xf32, #tpu.memory_space<vmem>>, vector<66x16xf32>
    %cst = arith.constant dense<0.000000e+00> : vector<4x16xf32>
    %22 = tpu.matmul %20, %21, %cst {dimension_numbers = #tpu.dot_dimension_numbers<[1], [0], [0], [1], [0, 0, 1, 1], [], []>} : vector<4x66xf32>, vector<66x16xf32>, vector<4x16xf32> -> vector<4x16xf32>
    %c0_10 = arith.constant 0 : index
    %c0_11 = arith.constant 0 : index
    %23 = vector.load %arg8[%c0_10, %c0_11] : memref<1x16xf32, #tpu.memory_space<vmem>>, vector<1x16xf32>
    %24 = vector.broadcast %23 : vector<1x16xf32> to vector<4x16xf32>
    %25 = arith.addf %22, %24 : vector<4x16xf32>
    %c0_12 = arith.constant 0 : index
    %c0_13 = arith.constant 0 : index
    %26 = vector.load %arg14[%c0_12, %c0_13] : memref<4x16xf32, #tpu.memory_space<vmem>>, vector<4x16xf32>
    tpu.vector_store %arg14[%c0_12, %c0_13], %25 {strides = array<i32>} : memref<4x16xf32, #tpu.memory_space<vmem>>, vector<4x16xf32>,
    %c0_14 = arith.constant 0 : index
    %c0_15 = arith.constant 0 : index
    %27 = vector.load %arg11[%c0_14, %c0_15] : memref<16x16xf32, #tpu.memory_space<vmem>>, vector<16x16xf32>
    %cst_16 = arith.constant dense<0.000000e+00> : vector<16x16xf32>
    %28 = tpu.matmul %27, %27, %cst_16 {dimension_numbers = #tpu.dot_dimension_numbers<[1], [0], [0], [1], [0, 0, 1, 1], [], []>} : vector<16x16xf32>, vector<16x16xf32>, vector<16x16xf32> -> vector<16x16xf32>
    %cst_17 = arith.constant dense<0.000000e+00> : vector<16x16xf32>
    %29 = tpu.matmul %28, %27, %cst_17 {dimension_numbers = #tpu.dot_dimension_numbers<[1], [0], [0], [1], [0, 0, 1, 1], [], []>} : vector<16x16xf32>, vector<16x16xf32>, vector<16x16xf32> -> vector<16x16xf32>
    %cst_18 = arith.constant dense<0.000000e+00> : vector<16x16xf32>
    %30 = tpu.matmul %28, %28, %cst_18 {dimension_numbers = #tpu.dot_dimension_numbers<[1], [0], [0], [1], [0, 0, 1, 1], [], []>} : vector<16x16xf32>, vector<16x16xf32>, vector<16x16xf32> -> vector<16x16xf32>
    %31 = tpu.iota {dimensions = array<i32: 0>} : vector<16x16xi32>
    %32 = tpu.iota {dimensions = array<i32: 1>} : vector<16x16xi32>
    %33 = arith.cmpi eq, %31, %32 : vector<16x16xi32>
    %34 = arith.extui %33 : vector<16x16xi1> to vector<16x16xi32>
    %35 = arith.sitofp %34 : vector<16x16xi32> to vector<16x16xf32>
    %36 = vector.extract_strided_slice %25 {offsets = [0, 0], sizes = [1, 16], strides = [1, 1]} : vector<4x16xf32> to vector<1x16xf32>
    %c1 = arith.constant 1 : index
    %37 = memref.load %arg0[%c1] : memref<4xf32, #tpu.memory_space<smem>>
    %c0_19 = arith.constant 0 : index
    %38 = memref.load %arg0[%c0_19] : memref<4xf32, #tpu.memory_space<smem>>
    %39 = arith.subf %37, %38 : f32
    %40 = arith.mulf %39, %39 : f32
    %41 = vector.broadcast %39 : f32 to vector<16x16xf32>
    %42 = arith.mulf %41, %27 : vector<16x16xf32>
    %43 = arith.addf %35, %42 : vector<16x16xf32>
    %cst_20 = arith.constant 5.000000e-01 : f32
    %44 = arith.mulf %cst_20, %40 : f32
    %45 = vector.broadcast %44 : f32 to vector<16x16xf32>
    %46 = arith.mulf %45, %28 : vector<16x16xf32>
    %47 = arith.addf %43, %46 : vector<16x16xf32>
    %48 = arith.mulf %40, %39 : f32
    %cst_21 = arith.constant 0.166666672 : f32
    %49 = arith.mulf %48, %cst_21 : f32
    %50 = vector.broadcast %49 : f32 to vector<16x16xf32>
    %51 = arith.mulf %50, %29 : vector<16x16xf32>
    %52 = arith.addf %47, %51 : vector<16x16xf32>
    %53 = arith.mulf %40, %40 : f32
    %cst_22 = arith.constant 0.0416666679 : f32
    %54 = arith.mulf %53, %cst_22 : f32
    %55 = vector.broadcast %54 : f32 to vector<16x16xf32>
    %56 = arith.mulf %55, %30 : vector<16x16xf32>
    %57 = arith.addf %52, %56 : vector<16x16xf32>
    %cst_23 = arith.constant dense<0.000000e+00> : vector<1x16xf32>
    %58 = tpu.matmul %36, %57, %cst_23 {dimension_numbers = #tpu.dot_dimension_numbers<[1], [0], [0], [1], [0, 0, 1, 1], [], []>} : vector<1x16xf32>, vector<16x16xf32>, vector<1x16xf32> -> vector<1x16xf32>
    %c2 = arith.constant 2 : index
    %59 = memref.load %arg0[%c2] : memref<4xf32, #tpu.memory_space<smem>>
    %c1_24 = arith.constant 1 : index
    %60 = memref.load %arg0[%c1_24] : memref<4xf32, #tpu.memory_space<smem>>
    %61 = arith.subf %59, %60 : f32
    %62 = arith.mulf %61, %61 : f32
    %63 = vector.broadcast %61 : f32 to vector<16x16xf32>
    %64 = arith.mulf %63, %27 : vector<16x16xf32>
    %65 = arith.addf %35, %64 : vector<16x16xf32>
    %cst_25 = arith.constant 5.000000e-01 : f32
    %66 = arith.mulf %cst_25, %62 : f32
    %67 = vector.broadcast %66 : f32 to vector<16x16xf32>
    %68 = arith.mulf %67, %28 : vector<16x16xf32>
    %69 = arith.addf %65, %68 : vector<16x16xf32>
    %70 = arith.mulf %62, %61 : f32
    %cst_26 = arith.constant 0.166666672 : f32
    %71 = arith.mulf %70, %cst_26 : f32
    %72 = vector.broadcast %71 : f32 to vector<16x16xf32>
    %73 = arith.mulf %72, %29 : vector<16x16xf32>
    %74 = arith.addf %69, %73 : vector<16x16xf32>
    %75 = arith.mulf %62, %62 : f32
    %cst_27 = arith.constant 0.0416666679 : f32
    %76 = arith.mulf %75, %cst_27 : f32
    %77 = vector.broadcast %76 : f32 to vector<16x16xf32>
    %78 = arith.mulf %77, %30 : vector<16x16xf32>
    %79 = arith.addf %74, %78 : vector<16x16xf32>
    %cst_28 = arith.constant dense<0.000000e+00> : vector<1x16xf32>
    %80 = tpu.matmul %58, %79, %cst_28 {dimension_numbers = #tpu.dot_dimension_numbers<[1], [0], [0], [1], [0, 0, 1, 1], [], []>} : vector<1x16xf32>, vector<16x16xf32>, vector<1x16xf32> -> vector<1x16xf32>
    %c3 = arith.constant 3 : index
    %81 = memref.load %arg0[%c3] : memref<4xf32, #tpu.memory_space<smem>>
    %c2_29 = arith.constant 2 : index
    %82 = memref.load %arg0[%c2_29] : memref<4xf32, #tpu.memory_space<smem>>
    %83 = arith.subf %81, %82 : f32
    %84 = arith.mulf %83, %83 : f32
    %85 = vector.broadcast %83 : f32 to vector<16x16xf32>
    %86 = arith.mulf %85, %27 : vector<16x16xf32>
    %87 = arith.addf %35, %86 : vector<16x16xf32>
    %cst_30 = arith.constant 5.000000e-01 : f32
    %88 = arith.mulf %cst_30, %84 : f32
    %89 = vector.broadcast %88 : f32 to vector<16x16xf32>
    %90 = arith.mulf %89, %28 : vector<16x16xf32>
    %91 = arith.addf %87, %90 : vector<16x16xf32>
    %92 = arith.mulf %84, %83 : f32
    %cst_31 = arith.constant 0.166666672 : f32
    %93 = arith.mulf %92, %cst_31 : f32
    %94 = vector.broadcast %93 : f32 to vector<16x16xf32>
    %95 = arith.mulf %94, %29 : vector<16x16xf32>
    %96 = arith.addf %91, %95 : vector<16x16xf32>
    %97 = arith.mulf %84, %84 : f32
    %cst_32 = arith.constant 0.0416666679 : f32
    %98 = arith.mulf %97, %cst_32 : f32
    %99 = vector.broadcast %98 : f32 to vector<16x16xf32>
    %100 = arith.mulf %99, %30 : vector<16x16xf32>
    %101 = arith.addf %96, %100 : vector<16x16xf32>
    %cst_33 = arith.constant dense<0.000000e+00> : vector<1x16xf32>
    %102 = tpu.matmul %80, %101, %cst_33 {dimension_numbers = #tpu.dot_dimension_numbers<[1], [0], [0], [1], [0, 0, 1, 1], [], []>} : vector<1x16xf32>, vector<16x16xf32>, vector<1x16xf32> -> vector<1x16xf32>
    %103 = tpu.concatenate %36, %58, %80, %102 in 0 : vector<1x16xf32>, vector<1x16xf32>, vector<1x16xf32>, vector<1x16xf32> -> vector<4x16xf32>
    %c0_34 = arith.constant 0 : index
    %c0_35 = arith.constant 0 : index
    %104 = vector.load %arg17[%c0_34, %c0_35] : memref<4x16xf32, #tpu.memory_space<vmem>>, vector<4x16xf32>
    tpu.vector_store %arg17[%c0_34, %c0_35], %103 {strides = array<i32>} : memref<4x16xf32, #tpu.memory_space<vmem>>, vector<4x16xf32>,
    %105 = tpu.concatenate %103, %25 in 0 : vector<4x16xf32>, vector<4x16xf32> -> vector<8x16xf32>
    %c0_36 = arith.constant 0 : index
    %c0_37 = arith.constant 0 : index
    %106 = vector.load %arg9[%c0_36, %c0_37] : memref<16x66xf32, #tpu.memory_space<vmem>>, vector<16x66xf32>
    %cst_38 = arith.constant dense<0.000000e+00> : vector<8x66xf32>
    %107 = tpu.matmul %105, %106, %cst_38 {dimension_numbers = #tpu.dot_dimension_numbers<[1], [0], [0], [1], [0, 0, 1, 1], [], []>} : vector<8x16xf32>, vector<16x66xf32>, vector<8x66xf32> -> vector<8x66xf32>
    %c0_39 = arith.constant 0 : index
    %c0_40 = arith.constant 0 : index
    %108 = vector.load %arg10[%c0_39, %c0_40] : memref<1x66xf32, #tpu.memory_space<vmem>>, vector<1x66xf32>
    %109 = vector.broadcast %108 : vector<1x66xf32> to vector<8x66xf32>
    %110 = arith.addf %107, %109 : vector<8x66xf32>
    %111 = vector.extract_strided_slice %110 {offsets = [0, 0], sizes = [4, 66], strides = [1, 1]} : vector<8x66xf32> to vector<4x66xf32>
    %c0_41 = arith.constant 0 : index
    %c0_42 = arith.constant 0 : index
    %112 = vector.load %arg16[%c0_41, %c0_42] : memref<4x66xf32, #tpu.memory_space<vmem>>, vector<4x66xf32>
    tpu.vector_store %arg16[%c0_41, %c0_42], %111 {strides = array<i32>} : memref<4x66xf32, #tpu.memory_space<vmem>>, vector<4x66xf32>,
    %113 = vector.extract_strided_slice %110 {offsets = [4, 0], sizes = [4, 66], strides = [1, 1]} : vector<8x66xf32> to vector<4x66xf32>
    %c0_43 = arith.constant 0 : index
    %c0_44 = arith.constant 0 : index
    %114 = vector.load %arg15[%c0_43, %c0_44] : memref<4x66xf32, #tpu.memory_space<vmem>>, vector<4x66xf32>
    tpu.vector_store %arg15[%c0_43, %c0_44], %113 {strides = array<i32>} : memref<4x66xf32, #tpu.memory_space<vmem>>, vector<4x66xf32>,
    %c0_45 = arith.constant 0 : index
    %c0_46 = arith.constant 0 : index
    %c0_47 = arith.constant 0 : index
    %115 = vector.load %arg4[%c0_45, %c0_46, %c0_47] : memref<4x2x32xf32, #tpu.memory_space<vmem>>, vector<4x2x32xf32>
    %c0_48 = arith.constant 0 : index
    %c0_49 = arith.constant 0 : index
    %116 = vector.load %arg5[%c0_48, %c0_49] : memref<4x2xf32, #tpu.memory_space<vmem>>, vector<4x2xf32>
    %117 = vector.extract_strided_slice %111 {offsets = [0, 0], sizes = [1, 32], strides = [1, 1]} : vector<4x66xf32> to vector<1x32xf32>
    %118 = vector.extract_strided_slice %111 {offsets = [0, 32], sizes = [1, 32], strides = [1, 1]} : vector<4x66xf32> to vector<1x32xf32>
    %119 = vector.extract_strided_slice %115 {offsets = [0, 0, 0], sizes = [1, 2, 32], strides = [1, 1, 1]} : vector<4x2x32xf32> to vector<1x2x32xf32>
    %120 = vector.shape_cast %119 : vector<1x2x32xf32> to vector<2x32xf32>
    %121 = tpu.concatenate %120, %117, %118 in 0 : vector<2x32xf32>, vector<1x32xf32>, vector<1x32xf32> -> vector<4x32xf32>
    %122 = vector.extract_strided_slice %19 {offsets = [0, 0, 0], sizes = [1, 8, 32], strides = [1, 1, 1]} : vector<4x8x32xf32> to vector<1x8x32xf32>
    %123 = vector.shape_cast %122 : vector<1x8x32xf32> to vector<8x32xf32>
    %124 = tpu.transpose %121, [1, 0] : vector<4x32xf32> -> vector<32x4xf32>
    %cst_50 = arith.constant dense<0.000000e+00> : vector<8x4xf32>
    %125 = tpu.matmul %123, %124, %cst_50 {dimension_numbers = #tpu.dot_dimension_numbers<[1], [0], [0], [1], [0, 0, 1, 1], [], []>} : vector<8x32xf32>, vector<32x4xf32>, vector<8x4xf32> -> vector<8x4xf32>
    %126 = vector.extract_strided_slice %125 {offsets = [0, 0], sizes = [8, 2], strides = [1, 1]} : vector<8x4xf32> to vector<8x2xf32>
    %127 = vector.extract_strided_slice %116 {offsets = [0, 0], sizes = [1, 2], strides = [1, 1]} : vector<4x2xf32> to vector<1x2xf32>
    %128 = vector.broadcast %127 : vector<1x2xf32> to vector<8x2xf32>
    %129 = arith.addf %126, %128 : vector<8x2xf32>
    %c0_51 = arith.constant 0 : index
    %c0_52 = arith.constant 0 : index
    %c0_53 = arith.constant 0 : index
    %130 = vector.load %arg12[%c0_51, %c0_52, %c0_53] : memref<4x8x2xf32, #tpu.memory_space<vmem>>, vector<1x8x2xf32>
    %131 = vector.shape_cast %130 : vector<1x8x2xf32> to vector<8x2xf32>
    %132 = vector.shape_cast %129 : vector<8x2xf32> to vector<1x8x2xf32>
    tpu.vector_store %arg12[%c0_51, %c0_52, %c0_53], %132 {strides = array<i32>} : memref<4x8x2xf32, #tpu.memory_space<vmem>>, vector<1x8x2xf32>,
    %133 = vector.extract_strided_slice %125 {offsets = [0, 2], sizes = [8, 2], strides = [1, 1]} : vector<8x4xf32> to vector<8x2xf32>
    %134 = vector.extract_strided_slice %111 {offsets = [0, 64], sizes = [1, 2], strides = [1, 1]} : vector<4x66xf32> to vector<1x2xf32>
    %135 = vector.broadcast %134 : vector<1x2xf32> to vector<8x2xf32>
    %136 = arith.addf %133, %135 : vector<8x2xf32>
    %c0_54 = arith.constant 0 : index
    %c0_55 = arith.constant 0 : index
    %c0_56 = arith.constant 0 : index
    %137 = vector.load %arg13[%c0_54, %c0_55, %c0_56] : memref<4x8x2xf32, #tpu.memory_space<vmem>>, vector<1x8x2xf32>
    %138 = vector.shape_cast %137 : vector<1x8x2xf32> to vector<8x2xf32>
    %139 = vector.shape_cast %136 : vector<8x2xf32> to vector<1x8x2xf32>
    tpu.vector_store %arg13[%c0_54, %c0_55, %c0_56], %139 {strides = array<i32>} : memref<4x8x2xf32, #tpu.memory_space<vmem>>, vector<1x8x2xf32>,
    %140 = vector.extract_strided_slice %111 {offsets = [1, 0], sizes = [1, 32], strides = [1, 1]} : vector<4x66xf32> to vector<1x32xf32>
    %141 = vector.extract_strided_slice %111 {offsets = [1, 32], sizes = [1, 32], strides = [1, 1]} : vector<4x66xf32> to vector<1x32xf32>
    %142 = vector.extract_strided_slice %115 {offsets = [1, 0, 0], sizes = [1, 2, 32], strides = [1, 1, 1]} : vector<4x2x32xf32> to vector<1x2x32xf32>
    %143 = vector.shape_cast %142 : vector<1x2x32xf32> to vector<2x32xf32>
    %144 = tpu.concatenate %143, %140, %141 in 0 : vector<2x32xf32>, vector<1x32xf32>, vector<1x32xf32> -> vector<4x32xf32>
    %145 = vector.extract_strided_slice %19 {offsets = [1, 0, 0], sizes = [1, 8, 32], strides = [1, 1, 1]} : vector<4x8x32xf32> to vector<1x8x32xf32>
    %146 = vector.shape_cast %145 : vector<1x8x32xf32> to vector<8x32xf32>
    %147 = tpu.transpose %144, [1, 0] : vector<4x32xf32> -> vector<32x4xf32>
    %cst_57 = arith.constant dense<0.000000e+00> : vector<8x4xf32>
    %148 = tpu.matmul %146, %147, %cst_57 {dimension_numbers = #tpu.dot_dimension_numbers<[1], [0], [0], [1], [0, 0, 1, 1], [], []>} : vector<8x32xf32>, vector<32x4xf32>, vector<8x4xf32> -> vector<8x4xf32>
    %149 = vector.extract_strided_slice %148 {offsets = [0, 0], sizes = [8, 2], strides = [1, 1]} : vector<8x4xf32> to vector<8x2xf32>
    %150 = vector.extract_strided_slice %116 {offsets = [1, 0], sizes = [1, 2], strides = [1, 1]} : vector<4x2xf32> to vector<1x2xf32>
    %151 = vector.broadcast %150 : vector<1x2xf32> to vector<8x2xf32>
    %152 = arith.addf %149, %151 : vector<8x2xf32>
    %c1_58 = arith.constant 1 : index
    %c0_59 = arith.constant 0 : index
    %c0_60 = arith.constant 0 : index
    %153 = vector.load %arg12[%c1_58, %c0_59, %c0_60] : memref<4x8x2xf32, #tpu.memory_space<vmem>>, vector<1x8x2xf32>
    %154 = vector.shape_cast %153 : vector<1x8x2xf32> to vector<8x2xf32>
    %155 = vector.shape_cast %152 : vector<8x2xf32> to vector<1x8x2xf32>
    tpu.vector_store %arg12[%c1_58, %c0_59, %c0_60], %155 {strides = array<i32>} : memref<4x8x2xf32, #tpu.memory_space<vmem>>, vector<1x8x2xf32>,
    %156 = vector.extract_strided_slice %148 {offsets = [0, 2], sizes = [8, 2], strides = [1, 1]} : vector<8x4xf32> to vector<8x2xf32>
    %157 = vector.extract_strided_slice %111 {offsets = [1, 64], sizes = [1, 2], strides = [1, 1]} : vector<4x66xf32> to vector<1x2xf32>
    %158 = vector.broadcast %157 : vector<1x2xf32> to vector<8x2xf32>
    %159 = arith.addf %156, %158 : vector<8x2xf32>
    %c1_61 = arith.constant 1 : index
    %c0_62 = arith.constant 0 : index
    %c0_63 = arith.constant 0 : index
    %160 = vector.load %arg13[%c1_61, %c0_62, %c0_63] : memref<4x8x2xf32, #tpu.memory_space<vmem>>, vector<1x8x2xf32>
    %161 = vector.shape_cast %160 : vector<1x8x2xf32> to vector<8x2xf32>
    %162 = vector.shape_cast %159 : vector<8x2xf32> to vector<1x8x2xf32>
    tpu.vector_store %arg13[%c1_61, %c0_62, %c0_63], %162 {strides = array<i32>} : memref<4x8x2xf32, #tpu.memory_space<vmem>>, vector<1x8x2xf32>,
    %163 = vector.extract_strided_slice %111 {offsets = [2, 0], sizes = [1, 32], strides = [1, 1]} : vector<4x66xf32> to vector<1x32xf32>
    %164 = vector.extract_strided_slice %111 {offsets = [2, 32], sizes = [1, 32], strides = [1, 1]} : vector<4x66xf32> to vector<1x32xf32>
    %165 = vector.extract_strided_slice %115 {offsets = [2, 0, 0], sizes = [1, 2, 32], strides = [1, 1, 1]} : vector<4x2x32xf32> to vector<1x2x32xf32>
    %166 = vector.shape_cast %165 : vector<1x2x32xf32> to vector<2x32xf32>
    %167 = tpu.concatenate %166, %163, %164 in 0 : vector<2x32xf32>, vector<1x32xf32>, vector<1x32xf32> -> vector<4x32xf32>
    %168 = vector.extract_strided_slice %19 {offsets = [2, 0, 0], sizes = [1, 8, 32], strides = [1, 1, 1]} : vector<4x8x32xf32> to vector<1x8x32xf32>
    %169 = vector.shape_cast %168 : vector<1x8x32xf32> to vector<8x32xf32>
    %170 = tpu.transpose %167, [1, 0] : vector<4x32xf32> -> vector<32x4xf32>
    %cst_64 = arith.constant dense<0.000000e+00> : vector<8x4xf32>
    %171 = tpu.matmul %169, %170, %cst_64 {dimension_numbers = #tpu.dot_dimension_numbers<[1], [0], [0], [1], [0, 0, 1, 1], [], []>} : vector<8x32xf32>, vector<32x4xf32>, vector<8x4xf32> -> vector<8x4xf32>
    %172 = vector.extract_strided_slice %171 {offsets = [0, 0], sizes = [8, 2], strides = [1, 1]} : vector<8x4xf32> to vector<8x2xf32>
    %173 = vector.extract_strided_slice %116 {offsets = [2, 0], sizes = [1, 2], strides = [1, 1]} : vector<4x2xf32> to vector<1x2xf32>
    %174 = vector.broadcast %173 : vector<1x2xf32> to vector<8x2xf32>
    %175 = arith.addf %172, %174 : vector<8x2xf32>
    %c2_65 = arith.constant 2 : index
    %c0_66 = arith.constant 0 : index
    %c0_67 = arith.constant 0 : index
    %176 = vector.load %arg12[%c2_65, %c0_66, %c0_67] : memref<4x8x2xf32, #tpu.memory_space<vmem>>, vector<1x8x2xf32>
    %177 = vector.shape_cast %176 : vector<1x8x2xf32> to vector<8x2xf32>
    %178 = vector.shape_cast %175 : vector<8x2xf32> to vector<1x8x2xf32>
    tpu.vector_store %arg12[%c2_65, %c0_66, %c0_67], %178 {strides = array<i32>} : memref<4x8x2xf32, #tpu.memory_space<vmem>>, vector<1x8x2xf32>,
    %179 = vector.extract_strided_slice %171 {offsets = [0, 2], sizes = [8, 2], strides = [1, 1]} : vector<8x4xf32> to vector<8x2xf32>
    %180 = vector.extract_strided_slice %111 {offsets = [2, 64], sizes = [1, 2], strides = [1, 1]} : vector<4x66xf32> to vector<1x2xf32>
    %181 = vector.broadcast %180 : vector<1x2xf32> to vector<8x2xf32>
    %182 = arith.addf %179, %181 : vector<8x2xf32>
    %c2_68 = arith.constant 2 : index
    %c0_69 = arith.constant 0 : index
    %c0_70 = arith.constant 0 : index
    %183 = vector.load %arg13[%c2_68, %c0_69, %c0_70] : memref<4x8x2xf32, #tpu.memory_space<vmem>>, vector<1x8x2xf32>
    %184 = vector.shape_cast %183 : vector<1x8x2xf32> to vector<8x2xf32>
    %185 = vector.shape_cast %182 : vector<8x2xf32> to vector<1x8x2xf32>
    tpu.vector_store %arg13[%c2_68, %c0_69, %c0_70], %185 {strides = array<i32>} : memref<4x8x2xf32, #tpu.memory_space<vmem>>, vector<1x8x2xf32>,
    %186 = vector.extract_strided_slice %111 {offsets = [3, 0], sizes = [1, 32], strides = [1, 1]} : vector<4x66xf32> to vector<1x32xf32>
    %187 = vector.extract_strided_slice %111 {offsets = [3, 32], sizes = [1, 32], strides = [1, 1]} : vector<4x66xf32> to vector<1x32xf32>
    %188 = vector.extract_strided_slice %115 {offsets = [3, 0, 0], sizes = [1, 2, 32], strides = [1, 1, 1]} : vector<4x2x32xf32> to vector<1x2x32xf32>
    %189 = vector.shape_cast %188 : vector<1x2x32xf32> to vector<2x32xf32>
    %190 = tpu.concatenate %189, %186, %187 in 0 : vector<2x32xf32>, vector<1x32xf32>, vector<1x32xf32> -> vector<4x32xf32>
    %191 = vector.extract_strided_slice %19 {offsets = [3, 0, 0], sizes = [1, 8, 32], strides = [1, 1, 1]} : vector<4x8x32xf32> to vector<1x8x32xf32>
    %192 = vector.shape_cast %191 : vector<1x8x32xf32> to vector<8x32xf32>
    %193 = tpu.transpose %190, [1, 0] : vector<4x32xf32> -> vector<32x4xf32>
    %cst_71 = arith.constant dense<0.000000e+00> : vector<8x4xf32>
    %194 = tpu.matmul %192, %193, %cst_71 {dimension_numbers = #tpu.dot_dimension_numbers<[1], [0], [0], [1], [0, 0, 1, 1], [], []>} : vector<8x32xf32>, vector<32x4xf32>, vector<8x4xf32> -> vector<8x4xf32>
    %195 = vector.extract_strided_slice %194 {offsets = [0, 0], sizes = [8, 2], strides = [1, 1]} : vector<8x4xf32> to vector<8x2xf32>
    %196 = vector.extract_strided_slice %116 {offsets = [3, 0], sizes = [1, 2], strides = [1, 1]} : vector<4x2xf32> to vector<1x2xf32>
    %197 = vector.broadcast %196 : vector<1x2xf32> to vector<8x2xf32>
    %198 = arith.addf %195, %197 : vector<8x2xf32>
    %c3_72 = arith.constant 3 : index
    %c0_73 = arith.constant 0 : index
    %c0_74 = arith.constant 0 : index
    %199 = vector.load %arg12[%c3_72, %c0_73, %c0_74] : memref<4x8x2xf32, #tpu.memory_space<vmem>>, vector<1x8x2xf32>
    %200 = vector.shape_cast %199 : vector<1x8x2xf32> to vector<8x2xf32>
    %201 = vector.shape_cast %198 : vector<8x2xf32> to vector<1x8x2xf32>
    tpu.vector_store %arg12[%c3_72, %c0_73, %c0_74], %201 {strides = array<i32>} : memref<4x8x2xf32, #tpu.memory_space<vmem>>, vector<1x8x2xf32>,
    %202 = vector.extract_strided_slice %194 {offsets = [0, 2], sizes = [8, 2], strides = [1, 1]} : vector<8x4xf32> to vector<8x2xf32>
    %203 = vector.extract_strided_slice %111 {offsets = [3, 64], sizes = [1, 2], strides = [1, 1]} : vector<4x66xf32> to vector<1x2xf32>
    %204 = vector.broadcast %203 : vector<1x2xf32> to vector<8x2xf32>
    %205 = arith.addf %202, %204 : vector<8x2xf32>
    %c3_75 = arith.constant 3 : index
    %c0_76 = arith.constant 0 : index
    %c0_77 = arith.constant 0 : index
    %206 = vector.load %arg13[%c3_75, %c0_76, %c0_77] : memref<4x8x2xf32, #tpu.memory_space<vmem>>, vector<1x8x2xf32>
    %207 = vector.shape_cast %206 : vector<1x8x2xf32> to vector<8x2xf32>
    %208 = vector.shape_cast %205 : vector<8x2xf32> to vector<1x8x2xf32>
    tpu.vector_store %arg13[%c3_75, %c0_76, %c0_77], %208 {strides = array<i32>} : memref<4x8x2xf32, #tpu.memory_space<vmem>>, vector<1x8x2xf32>,
    return
  }
}

</mosaic_0001>

<bundles_post_ra>
// kernel: koodos_forward.1
= control target key start
LH: loop header
LB: loop body
LE: loop exit
PB: predicated region body
PF: predicated region fallthrough
CT: control target
= control target key end

     0   :  { %s2114_s0 = inlined_call_operand.vmem [shape: f32[4], index: 0, kind: input, shape index: {}]   ;;  %s2115_s1 = inlined_call_operand.vmem [shape: f32[4,8,2], index: 1, kind: input, shape index: {}]   ;;  %s2116_s2 = inlined_call_operand.vmem [shape: f32[2,32], index: 2, kind: input, shape index: {}]   ;;  %s2117_s3 = inlined_call_operand.vmem [shape: f32[1,32], index: 3, kind: input, shape index: {}]   ;;  %s2118_s4 = inlined_call_operand.vmem [shape: f32[4,2,32], index: 4, kind: input, shape index: {}]   ;;  %s2119_s5 = inlined_call_operand.vmem [shape: f32[4,2], index: 5, kind: input, shape index: {}]   ;;  %s2120_s6 = inlined_call_operand.vmem [shape: f32[4,66], index: 6, kind: input, shape index: {}]   ;;  %s2121_s7 = inlined_call_operand.vmem [shape: f32[66,16], index: 7, kind: input, shape index: {}]   ;;  %s2122_s8 = inlined_call_operand.vmem [shape: f32[1,16], index: 8, kind: input, shape index: {}]   ;;  %s2123_s9 = inlined_call_operand.vmem [shape: f32[16,66], index: 9, kind: input, shape index: {}]   ;;  %s2124_s10 = inlined_call_operand.vmem [shape: f32[1,66], index: 10, kind: input, shape index: {}]   ;;  %s2125_s11 = inlined_call_operand.vmem [shape: f32[16,16], index: 11, kind: input, shape index: {}]   ;;  %s2126_s12 = inlined_call_operand.vmem [shape: f32[4,8,2], index: 12, kind: output, shape index: {0}]   ;;  %s2127_s13 = inlined_call_operand.vmem [shape: f32[4,8,2], index: 13, kind: output, shape index: {1}]   ;;  %s2128_s14 = inlined_call_operand.hbm [shape: f32[4,16], index: 14, kind: output, shape index: {2}]   ;;  %s2129_s15 = inlined_call_operand.hbm [shape: f32[4,66], index: 15, kind: output, shape index: {3}]   ;;  %s2130_s16 = inlined_call_operand.hbm [shape: f32[4,66], index: 16, kind: output, shape index: {4}]   ;;  %s2131_s17 = inlined_call_operand.hbm [shape: f32[4,16], index: 17, kind: output, shape index: {5}]  }
   0x1   :  { %2133 = sst [smem:[#allocation15_spill]] %s2114_s0 }
   0x2   :  { %2134 = sst [smem:[#allocation16_spill]] %s2115_s1 }
   0x3   :  { %23 = vsyncpa [#allocation4], 0 }
   0x4   :  { %24 = vsyncpa [#allocation3], 0 }
   0x5   :  { %25 = vsyncpa [#allocation7], 0 }
   0x6   :  { %26 = vsyncpa [#allocation10], 0  ;;  %s2135_s26 = sld [smem:[#allocation15_spill]] }
   0xc   :  { %s33_s27 = sshll.u32 %s2135_s26, 4  ;;  %s34_s27 = int_to_ptr.vmem [resolvable:$true] %s33_s27 }
   0xd   :  { %s1574_s28 = scalar_lea.vmem %s34_s27, 16  ;;  %p1579_p1 = scmp.lt.s32.totalorder %s34_s27, %s34_s27 }
   0xe   :  { %p1575_p0 = scmp.ne.s32.totalorder %s34_s27, %s1574_s28  ;;  %p1580_p2 = scmp.lt.s32.totalorder %s1574_s28, %s1574_s28 }
  0x10   :  { %p1581_p3 = por %p1580_p2, %p1579_p1 }
  0x12   :  { %p1582_p4 = pnand %p1581_p3, %p1575_p0 }
  0x14   :  { %1585 = shalt.err (!%p1582_p4)
}
  0x15   :  { %s1674_s29 = smov [#allocation2]  }
  0x16   :  { %36 = dma.vmem_to_smem %s34_s27, 16, %s1674_s29, [#allocation4]  }
  0x17   :  { %1666 = dma.done.wait [#allocation4], 16  }
  0x18   :  { %1667 = vsyncadd [#allocation4], 4294967280 }
  0x19   :  { %62 = sfence }
  0x1a   :  { %v1782_v0 = vld [vmem:[%s2125_s11 + $0x8] sm:$0xff]  ;;  %v1787_v1 = vld [vmem:[%s2125_s11] sm:$0xff]  ;;  %vm238_vm0 = vcmask 130048   ;;  %vm160_vm1 = vcmask 1041408   ;;  %v1675_v3 = vmov 0.0   ;;  %v147_v4 = vld [vmem:[%s2121_s7 + $0x38] sm:$0xff]  ;;  %v88_v19 = vlaneseq }
  0x1b   :  { %v148_v2 = vld [vmem:[%s2121_s7 + $0x40] sm:$0x3]  ;;  %1480 = vmatprep.subr.mxu1 %v1782_v0  ;;  %1484 = vmatprep.mubr.msk.f32.mxu1 %vm238_vm0, %v1787_v1  ;;  %v146_v5 = vld [vmem:[%s2121_s7 + $0x30] sm:$0xff]  ;;  %v145_v6 = vld [vmem:[%s2121_s7 + $0x28] sm:$0xff]  ;;  %vm1676_vm2 = vmmov 0   ;;  %vm156_vm3 = vcmask 539648  }
  0x1c   :  { %1481 = vmatpush3.msra.mxu1 %v1782_v0  ;;  %1459 = vmatprep.subr.mxu0 %v1675_v3  ;;  %v144_v7 = vld [vmem:[%s2121_s7 + $0x20] sm:$0xff]  ;;  %v143_v8 = vld [vmem:[%s2121_s7 + $0x18] sm:$0xff]  ;;  %v142_v9 = vld [vmem:[%s2121_s7 + $0x10] sm:$0xff]  ;;  %vm234_vm4 = vcmask 125952   ;;  %s1395_s11 = sld [smem:[#allocation2 + $0x1]]  ;;  %v1882_v20 = vshrl.u32 %v88_v19, 7 }
  0x1d   :  { %1482 = vmatprep.subr.mxu1 %v1787_v1  ;;  %1460 = vmatpush3.msk.msra.mxu0 %vm160_vm1, %v148_v2  ;;  %v141_v10 = vld [vmem:[%s2121_s7 + $0x8] sm:$0xff]  ;;  %v140_v11 = vld [vmem:[%s2121_s7] sm:$0xff]  ;;  %s488_s23 = sld [smem:[#allocation2]]  ;;  %v480_v22 = vand.u32 127, %v88_v19  ;;  %vm798_vm7 = vcmask 1040384   ;;  %vm801_vm8 = vcmask 1042432  }
  0x1e   :  { %1483 = vmatpush3.msra.mxu1 %v1787_v1  ;;  %1461 = vmatprep.subr.mxu0 %v1675_v3  ;;  %v139_v12 = vld [vmem:[%s2120_s6] sm:$0xf]  ;;  %s1397_s24 = sld [smem:[#allocation2 + $0x2]]  ;;  %v478_v21 = vadd.s32 8, %v1882_v20  ;;  %vm806_vm9 = vcmask 1043456   ;;  %vm892_vm10 = vcmask 539652  }
  0x1f   :  { %1485 = vmatmul.mubr.msk.f32.vlgmr.msra.gmra.mxu1 %vm238_vm0, %v1782_v0  ;;  %1462 = vmatpush3.msra.mxu0 %v147_v4  ;;  %v1384_v16 = vld [vmem:[%s2122_s8] ss:$0 sm:$0xff]  ;;  %s1399_s25 = sld [smem:[#allocation2 + $0x3]]  ;;  %vm481_vm6 = vcmp.eq.s32.totalorder %v1882_v20, %v480_v22  ;;  %vm890_vm11 = vcmask 535552   ;;  %vm908_vm12 = vcmask 261120  }
  0x20   :  { %1463 = vmatprep.subr.mxu0 %v1675_v3  ;;  %1487 = vmatprep.subr.mxu1 %v1782_v0  ;;  %vm482_vm5 = vcmp.eq.s32.totalorder %v478_v21, %v480_v22  ;;  %v1393_v33 = vsel %vm481_vm6, 1.0, %v1675_v3 }
  0x21   :  { %1464 = vmatpush3.msra.mxu0 %v146_v5  ;;  %1488 = vmatpush3.msra.mxu1 %v1782_v0  ;;  %v1394_v27 = vsel %vm482_vm5, 1.0, %v1675_v3 }
  0x22   :  { %1465 = vmatprep.subr.mxu0 %v1675_v3  ;;  %1489 = vmatprep.subr.mxu1 %v1787_v1 }
  0x23   :  { %1466 = vmatpush3.msra.mxu0 %v145_v6  ;;  %1490 = vmatpush3.msra.mxu1 %v1787_v1  ;;  %s1872_s26 = ssub.f32 %s1395_s11, %s488_s23 }
  0x24   :  { %1467 = vmatprep.subr.mxu0 %v1675_v3  ;;  %1477 = vmatprep.mubr.msk.f32.mxu0 %vm1676_vm2, %v1675_v3  ;;  %s1874_s27 = ssub.f32 %s1397_s24, %s1395_s11 }
  0x25   :  { %1468 = vmatpush3.msra.mxu0 %v144_v7  ;;  %s1878_s8 = smul.f32 %s1872_s26, %s1872_s26  ;;  %s1880_s28 = ssub.f32 %s1399_s25, %s1397_s24  ;;  %v491_v23 = vstv %s1872_s26 }
  0x26   :  { %1469 = vmatprep.subr.mxu0 %v1675_v3  ;;  %s1886_s29 = smul.f32 %s1874_s27, %s1874_s27  ;;  %v592_v25 = vstv %s1874_s27  ;;  %v493_v26 = vmul.f32 %v491_v23, %v1782_v0  ;;  %v492_v32 = vmul.f32 %v491_v23, %v1787_v1 }
  0x27   :  { %1470 = vmatpush3.msra.mxu0 %v143_v8  ;;  %s496_s0 = smul.f32 0.5, %s1878_s8  ;;  %v693_v24 = vstv %s1880_s28  ;;  %v594_v30 = vmul.f32 %v592_v25, %v1782_v0  ;;  %v593_v34 = vmul.f32 %v592_v25, %v1787_v1 }
  0x28   :  { %1471 = vmatprep.subr.mxu0 %v1675_v3  ;;  %s1891_s30 = smul.f32 %s1880_s28, %s1880_s28  ;;  %v695_v28 = vmul.f32 %v693_v24, %v1782_v0  ;;  %v694_v35 = vmul.f32 %v693_v24, %v1787_v1  ;;  %v495_v36 = vadd.f32 %v1394_v27, %v493_v26  ;;  %v494_v45 = vadd.f32 %v1393_v33, %v492_v32 }
  0x29   :  { %1472 = vmatpush3.msra.mxu0 %v142_v9  ;;  %s502_s18 = smul.f32 %s1878_s8, %s1872_s26  ;;  %v497_v29 = vstv %s496_s0  ;;  %v596_v44 = vadd.f32 %v1394_v27, %v594_v30  ;;  %v595_v49 = vadd.f32 %v1393_v33, %v593_v34 }
  0x2a   :  { %1473 = vmatprep.subr.mxu0 %v1675_v3  ;;  %s597_s19 = smul.f32 0.5, %s1886_s29  ;;  %v697_v41 = vadd.f32 %v1394_v27, %v695_v28  ;;  %v696_v50 = vadd.f32 %v1393_v33, %v694_v35 }
  0x2b   :  { %1474 = vmatpush3.msra.mxu0 %v141_v10  ;;  %s704_s1 = smul.f32 %s1891_s30, %s1880_s28 }
  0x2c   :  { %1475 = vmatprep.subr.mxu0 %v1675_v3  ;;  %s698_s20 = smul.f32 0.5, %s1891_s30  ;;  %v598_v40 = vstv %s597_s19  ;;  %s2136_s19 = sld [smem:[#allocation16_spill]] }
  0x2d   :  { %1476 = vmatpush3.msra.mxu0 %v140_v11  ;;  %s1901_s21 = smul.f32 0.16666667, %s502_s18 }
  0x2e   :  { %1478 = vmatmul.mubr.msk.f32.vlgmr.msra.gmra.mxu0 %vm156_vm3, %v139_v12  ;;  %1515 = vmatprep.subr.mxu0 %v1675_v3  ;;  %s509_s22 = smul.f32 %s1878_s8, %s1878_s8  ;;  %v699_v31 = vstv %s698_s20 }
  0x2f   :  { %1519 = vmatprep.mubr.msk.f32.mxu0 %vm1676_vm2, %v1675_v3  ;;  %s1907_s6 = smul.f32 0.16666667, %s704_s1  ;;  %v504_v37 = vstv %s1901_s21 }
  0x30   :  { %s711_s7 = smul.f32 %s1891_s30, %s1891_s30 }
  0x31   :  { %s603_s11 = smul.f32 %s1886_s29, %s1874_s27  ;;  %v706_v38 = vstv %s1907_s6 }
  0x32   :  { %s610_s23 = smul.f32 %s1886_s29, %s1886_s29 }
  0x33   :  { %s1924_s24 = smul.f32 0.041666668, %s509_s22 }
  0x34   :  { %s1928_s25 = smul.f32 0.041666668, %s711_s7 }
  0x35   :  { %s1931_s26 = smul.f32 0.16666667, %s603_s11  ;;  %v511_v54 = vstv %s1924_s24 }
  0x36   :  { %s1935_s27 = smul.f32 0.041666668, %s610_s23  ;;  %v713_v55 = vstv %s1928_s25  ;;  %s1679_s23 = smov 96  }
  0x37   :  { %v605_v57 = vstv %s1931_s26 }
  0x38   :  { %v612_v0 = vstv %s1935_s27 }
  0xdf   :  { %v1846_v13 = vpop.f32.mrf.mxu1 }
  0xe0   :  { %1494 = vmatprep.subr.mxu1 %v1846_v13  ;;  %v499_v39 = vmul.f32 %v1846_v13, %v497_v29  ;;  %v701_v42 = vmul.f32 %v1846_v13, %v699_v31  ;;  %v600_v51 = vmul.f32 %v1846_v13, %v598_v40 }
  0xe1   :  { %v1849_v14 = vpop.f32.mrf.mxu1 }
  0xe2   :  { %1491 = vmatprep.mubr.msk.f32.mxu1 %vm238_vm0, %v1849_v14  ;;  %v498_v46 = vmul.f32 %v497_v29, %v1849_v14  ;;  %v700_v53 = vmul.f32 %v699_v31, %v1849_v14  ;;  %v501_v56 = vadd.f32 %v499_v39, %v495_v36  ;;  %v703_v58 = vadd.f32 %v701_v42, %v697_v41  ;;  %v809_v36 = vld [vmem:[%s2123_s9 + $0x8] sm:$0xff]  ;;  %v65_v42 = vld [vmem:[%s2136_s19 + $0x10] sm:$0xff] }
  0xe3   :  { %1492 = vmatmul.mubr.msk.f32.vlgmr.msra.gmra.mxu1 %vm238_vm0, %v1846_v13  ;;  %v599_v61 = vmul.f32 %v598_v40, %v1849_v14  ;;  %v602_v6 = vadd.f32 %v600_v51, %v596_v44  ;;  %v1677_v39 = vmov 0   ;;  %v1678_v40 = vmov 1   ;;  %v64_v41 = vld [vmem:[%s2136_s19 + $0x8] sm:$0xff] }
  0xe4   :  { %1495 = vmatpush3.msra.mxu1 %v1846_v13  ;;  %1498 = vmatprep.mubr.msk.f32.mxu1 %vm238_vm0, %v1849_v14  ;;  %v500_v60 = vadd.f32 %v498_v46, %v494_v45  ;;  %v702_v8 = vadd.f32 %v700_v53, %v696_v50  ;;  %v1401_v50 = vld [vmem:[%s2124_s10] ss:$0 sm:$0xff]  ;;  %s1680_s10 = smov 66  }
  0xe5   :  { %1496 = vmatprep.subr.mxu1 %v1849_v14  ;;  %1561 = vset.pattern.permute.xlu0 %v1677_v39 }
  0xe6   :  { %1497 = vmatpush3.msra.mxu1 %v1849_v14  ;;  %v601_v14 = vadd.f32 %v599_v61, %v595_v49  ;;  %1562 = vset.pattern.permute.xlu1 %v1678_v40  ;;  %v1299_v61 = vsub.s32 3, %v1882_v20 }
  0xe7   :  { %1499 = vmatmul.mubr.msk.f32.vlgmr.msra.gmra.mxu1 %vm238_vm0, %v1846_v13  ;;  %1501 = vmatprep.subr.mxu1 %v1675_v3 }
  0xe8   :  { %1505 = vmatprep.mubr.msk.f32.mxu1 %vm1676_vm2, %v1675_v3 }
  0xee   :  { %v230_v15 = vpop.f32.mrf.mxu0 }
  0xef   :  { %v1868_v18 = vadd.f32 %v1384_v16, %v230_v15 }
  0xf0   :  { %v1479_v17 = vpop.f32.mrf.mxu0 }
  0xf1   :  { %235 = vst.msk [vmem:[#allocation5] sm:$0xf] %vm234_vm4, %v1868_v18  ;;  %v804_v46 = vrot.slane %v1868_v18, 4 }
 0x1a3   :  { %v1493_v43 = vpop.f32.mrf.mxu1 }
 0x1a4   :  { %v506_v47 = vmul.f32 %v1493_v43, %v504_v37  ;;  %v708_v48 = vmul.f32 %v1493_v43, %v706_v38  ;;  %v607_v7 = vmul.f32 %v1493_v43, %v605_v57  ;;  %v66_v43 = vld [vmem:[%s2136_s19 + $0x18] sm:$0xff] }
 0x1a5   :  { %v392_v52 = vpop.f32.mrf.mxu1 }
 0x1a6   :  { %v505_v59 = vmul.f32 %v504_v37, %v392_v52  ;;  %v707_v62 = vmul.f32 %v706_v38, %v392_v52  ;;  %v508_v1 = vadd.f32 %v506_v47, %v501_v56  ;;  %v710_v2 = vadd.f32 %v708_v48, %v703_v58  ;;  %v808_v37 = vld [vmem:[%s2123_s9] sm:$0xff]  ;;  %s1682_s9 = smov [#allocation5]  }
 0x1a7   :  { %v1500_v63 = vpop.f32.mrf.mxu1  ;;  %v606_v15 = vmul.f32 %v605_v57, %v392_v52  ;;  %v609_v22 = vadd.f32 %v607_v7, %v602_v6  ;;  %v63_v38 = vld [vmem:[%s2136_s19] sm:$0xff]  ;;  %v1999_v56 = vsub.s32 0, %v1882_v20  ;;  %v2002_v57 = vsub.s32 1, %v1882_v20  ;;  %s1329_s21 = sshll.u32 %s1682_s9, 4  ;;  %s1330_s21 = int_to_ptr.vmem [resolvable:$true] %s1329_s21 }
 0x1a8   :  { %v513_v4 = vmul.f32 %v1500_v63, %v511_v54  ;;  %v715_v5 = vmul.f32 %v1500_v63, %v713_v55  ;;  %v507_v10 = vadd.f32 %v505_v59, %v500_v60  ;;  %v709_v16 = vadd.f32 %v707_v62, %v702_v8  ;;  %70 = vperm.xlu0 %1561, %v63_v38  }
 0x1a9   :  { %v467_v9 = vpop.f32.mrf.mxu1  ;;  %v614_v17 = vmul.f32 %v1500_v63, %v612_v0  ;;  %v608_v25 = vadd.f32 %v606_v15, %v601_v14  ;;  %97 = vperm.xlu1 %1562, %v63_v38   ;;  %v1194_v60 = vsub.s32 2, %v1882_v20 }
 0x1aa   :  { %v515_v11 = vadd.f32 %v513_v4, %v508_v1  ;;  %v717_v12 = vadd.f32 %v715_v5, %v710_v2  ;;  %v512_v13 = vmul.f32 %v511_v54, %v467_v9  ;;  %v714_v19 = vmul.f32 %v713_v55, %v467_v9  ;;  %v67_v5 = vld [vmem:[%s2116_s2] sm:$0x3] }
 0x1ab   :  { %v613_v23 = vmul.f32 %v612_v0, %v467_v9  ;;  %v616_v26 = vadd.f32 %v614_v17, %v609_v22  ;;  %v91_v7 = vrot.slane %v67_v5, %v1999_v56  ;;  %v115_v8 = vrot.slane %v67_v5, %v2002_v57 }
 0x1ac   :  { %v514_v21 = vadd.f32 %v512_v13, %v507_v10  ;;  %1502 = vmatpush3.msra.mxu1 %v515_v11  ;;  %1516 = vmatpush3.msra.mxu0 %v717_v12  ;;  %v716_v24 = vadd.f32 %v714_v19, %v709_v16 }
 0x1ad   :  { %1503 = vmatprep.subr.mxu1 %v1675_v3  ;;  %1517 = vmatprep.subr.mxu0 %v1675_v3  ;;  %v615_v27 = vadd.f32 %v613_v23, %v608_v25 }
 0x1ae   :  { %1504 = vmatpush3.msra.mxu1 %v514_v21  ;;  %1518 = vmatpush3.msra.mxu0 %v716_v24  ;;  %v1383_v21 = vld [vmem:[%s2117_s3] ss:$0 sm:$0xff] }
 0x1af   :  { %1506 = vmatmul.mubr.msk.f32.vlgmr.msra.gmra.mxu1 %vm238_vm0, %v1868_v18  ;;  %1508 = vmatprep.subr.mxu1 %v1675_v3 }
 0x1b0   :  { %1512 = vmatprep.mubr.msk.f32.mxu1 %vm1676_vm2, %v1675_v3  ;;  %1509 = vmatpush3.msra.mxu1 %v616_v26 }
 0x1b1   :  { %1529 = vmatprep.subr.mxu0 %v1675_v3  ;;  %1510 = vmatprep.subr.mxu1 %v1675_v3 }
 0x1b2   :  { %1511 = vmatpush3.msra.mxu1 %v615_v27  ;;  %75 = vperm.xlu0 %1561, %v64_v41  }
 0x1b3   :  { %1522 = vmatprep.subr.mxu1 %v1675_v3  ;;  %101 = vperm.xlu1 %1562, %v64_v41   ;;  %v897_v41 = vld [vmem:[%s2118_s4 + $0x6] sm:$0x3] }
 0x1b6   :  { %80 = vperm.xlu0 %1561, %v65_v42  }
 0x1b7   :  { %1563 = vset.pattern.permute.xlu1 %v1677_v39 }
 0x1b8   :  { %85 = vperm.xlu1 %1563, %v66_v43  }
 0x1ba   :  { %1564 = vset.pattern.permute.xlu0 %v1678_v40 }
 0x1bb   :  { %105 = vperm.xlu0 %1564, %v65_v42  }
 0x1bc   :  { %1565 = vset.pattern.permute.xlu1 %v1678_v40  ;;  %v896_v40 = vld [vmem:[%s2118_s4 + $0x4] sm:$0x3] }
 0x1bd   :  { %109 = vperm.xlu1 %1565, %v66_v43  }
 0x223   :  { %v71_v0 = vpop.permute.xlu0 %70 }
 0x224   :  { %v98_v1 = vpop.permute.xlu1 %97  ;;  %v92_v10 = vmul.f32 %v91_v7, %v71_v0 }
 0x225   :  { %v116_v11 = vmul.f32 %v115_v8, %v98_v1 }
 0x227   :  { %v120_v17 = vadd.f32 %v116_v11, %v92_v10 }
 0x229   :  { %v131_v25 = vadd.f32 %v1383_v21, %v120_v17 }
 0x22b   :  { %1566 = vtanh.f32 %v131_v25 }
 0x22d   :  { %v76_v2 = vpop.permute.xlu0 %75 }
 0x22e   :  { %v102_v4 = vpop.permute.xlu1 %101  ;;  %v93_v12 = vmul.f32 %v91_v7, %v76_v2 }
 0x22f   :  { %v117_v13 = vmul.f32 %v115_v8, %v102_v4 }
 0x231   :  { %v81_v6 = vpop.permute.xlu0 %80  ;;  %v121_v22 = vadd.f32 %v117_v13, %v93_v12 }
 0x232   :  { %v94_v19 = vmul.f32 %v91_v7, %v81_v6 }
 0x233   :  { %v86_v9 = vpop.permute.xlu1 %85  ;;  %v132_v27 = vadd.f32 %v1383_v21, %v121_v22 }
 0x234   :  { %v95_v23 = vmul.f32 %v91_v7, %v86_v9 }
 0x235   :  { %1568 = vtanh.f32 %v132_v27 }
 0x236   :  { %v106_v15 = vpop.permute.xlu0 %105 }
 0x237   :  { %v118_v14 = vmul.f32 %v115_v8, %v106_v15 }
 0x238   :  { %v110_v16 = vpop.permute.xlu1 %109  ;;  %v1567_v42 = vpop.eup %1566 }
 0x239   :  { %v119_v24 = vmul.f32 %v115_v8, %v110_v16  ;;  %v122_v26 = vadd.f32 %v118_v14, %v94_v19 }
 0x242   :  { %v1569_v43 = vpop.eup %1568 }
 0x26f   :  { %v585_v28 = vpop.f32.mrf.mxu1 }
 0x270   :  { %1513 = vmatmul.mubr.msk.f32.vlgmr.msra.gmra.mxu1 %vm238_vm0, %v585_v28  ;;  %v791_v30 = vrot.slane %v585_v28, 7  ;;  %v123_v28 = vadd.f32 %v119_v24, %v95_v23 }
 0x271   :  { %v1507_v29 = vpop.f32.mrf.mxu1  ;;  %1526 = vmatprep.mubr.msk.f32.mxu1 %vm1676_vm2, %v1675_v3  ;;  %1523 = vmatpush3.msra.mxu1 %v809_v36 }
 0x272   :  { %v799_v33 = vsel %vm798_vm7, %v1868_v18, %v791_v30  ;;  %1524 = vmatprep.subr.mxu1 %v1675_v3  ;;  %v133_v29 = vadd.f32 %v1383_v21, %v122_v26  ;;  %v134_v30 = vadd.f32 %v1383_v21, %v123_v28 }
 0x273   :  { %1525 = vmatpush3.msra.mxu1 %v808_v37 }
 0x274   :  { %1534 = vmatprep.subr.mxu1 %v1675_v3  ;;  %1570 = vtanh.f32 %v133_v29 }
 0x275   :  { %1572 = vtanh.f32 %v134_v30 }
 0x330   :  { %v686_v31 = vpop.f32.mrf.mxu1 }
 0x331   :  { %v793_v32 = vrot.slane %v686_v31, 6  ;;  %1520 = vmatmul.mubr.msk.f32.vlgmr.msra.gmra.mxu0 %vm238_vm0, %v686_v31  ;;  %v894_v31 = vld [vmem:[%s2118_s4] sm:$0x3] }
 0x332   :  { %v1514_v34 = vpop.f32.mrf.mxu1  ;;  %1531 = vmatprep.mubr.msk.f32.mxu0 %vm1676_vm2, %v1675_v3 }
 0x333   :  { %v800_v35 = vsel %vm160_vm1, %v799_v33, %v793_v32  ;;  %v895_v32 = vld [vmem:[%s2118_s4 + $0x2] sm:$0x3]  ;;  %s1681_s4 = smov [#allocation6]  }
 0x334   :  { %s1339_s19 = sshll.u32 %s1681_s4, 4  ;;  %s1340_s19 = int_to_ptr.vmem [resolvable:$true] %s1339_s19 }
 0x335   :  { %s1586_s22 = scalar_lea.vmem %s1340_s19, 64  ;;  %p1591_p6 = scmp.lt.s32.totalorder %s1340_s19, %s1340_s19 }
 0x336   :  { %p1587_p5 = scmp.ne.s32.totalorder %s1340_s19, %s1586_s22  ;;  %p1592_p7 = scmp.lt.s32.totalorder %s1586_s22, %s1586_s22 }
 0x338   :  { %p1593_p8 = por %p1592_p7, %p1591_p6 }
 0x33a   :  { %p1594_p9 = pnand %p1593_p8, %p1587_p5 }
 0x3f1   :  { %v787_v44 = vpop.f32.mrf.mxu0 }
 0x3f2   :  { %v796_v45 = vrot.slane %v787_v44, 5 }
 0x3f3   :  { %v1521_v47 = vpop.f32.mrf.mxu0 }
 0x3f4   :  { %v802_v48 = vsel %vm801_vm8, %v800_v35, %v796_v45 }
 0x3f5   :  { %v807_v49 = vsel %vm806_vm9, %v802_v48, %v804_v46  ;;  %803 = vst.msk [vmem:[#allocation9] sm:$0xf] %vm234_vm4, %v802_v48 }
 0x3f6   :  { %1527 = vmatmul.mubr.msk.f32.vlgmr.msra.gmra.mxu1 %vm238_vm0, %v807_v49 }
 0x3f7   :  { %1536 = vmatprep.mubr.msk.f32.mxu1 %vm1676_vm2, %v1675_v3 }
 0x4b6   :  { %v886_v51 = vpop.f32.mrf.mxu1 }
 0x4b7   :  { %v1991_v52 = vadd.f32 %v1401_v50, %v886_v51  ;;  %v1571_v50 = vpop.eup %1570 }
 0x4b8   :  { %v1528_v18 = vpop.f32.mrf.mxu1  ;;  %v1573_v51 = vpop.eup %1572 }
 0x4b9   :  { %v902_v53 = vrot.slane %v1991_v52, 5  ;;  %v900_v54 = vrot.slane %v1991_v52, 6  ;;  %893 = vst.msk [vmem:[#allocation6 - $0x4] sm:$0xf0] %vm892_vm10, %v1991_v52  ;;  %v1006_v55 = vrot.slane %v1991_v52, 7  ;;  %v995_v58 = vrot.slane %v1991_v52, %v1999_v56 }
 0x4ba   :  { %891 = vst.msk [vmem:[#allocation8] sm:$0xf] %vm890_vm11, %v1991_v52  ;;  %v1099_v59 = vrot.slane %v1991_v52, %v2002_v57  ;;  %v1202_v62 = vrot.slane %v1991_v52, %v1194_v60  ;;  %v1307_v63 = vrot.slane %v1991_v52, %v1299_v61  ;;  %v1214_v37 = vrot.slane %v1991_v52, 1 }
 0x4bb   :  { %903 = vrot.lane.b32.xlu1 %v902_v53, %s1679_s23  ;;  %1008 = vrot.lane.b32.xlu0 %v900_v54, %s1679_s23  ;;  %v906_v33 = vsel %vm160_vm1, %v894_v31, %v900_v54  ;;  %v1011_v35 = vsel %vm160_vm1, %v895_v32, %v1006_v55  ;;  %v1114_v44 = vsel %vm160_vm1, %v896_v40, %v1991_v52 }
 0x4bc   :  { %v1219_v46 = vsel %vm160_vm1, %v897_v41, %v1214_v37 }
 0x4bf   :  { %1111 = vrot.lane.b32.xlu1 %v1006_v55, %s1679_s23  ;;  %1216 = vrot.lane.b32.xlu0 %v1991_v52, %s1679_s23  ;;  %v898_v52 = vld [vmem:[%s2119_s5] sm:$0xf] }
 0x4c3   :  { %997 = vrot.lane.b32.xlu1 %v995_v58, %s1680_s10  ;;  %1101 = vrot.lane.b32.xlu0 %v1099_v59, %s1680_s10 }
 0x4c7   :  { %1204 = vrot.lane.b32.xlu1 %v1202_v62, %s1680_s10  ;;  %1309 = vrot.lane.b32.xlu0 %v1307_v63, %s1680_s10 }
 0x52d   :  { %v904_v34 = vpop.permute.xlu1 %903  ;;  %v1009_v36 = vpop.permute.xlu0 %1008 }
 0x52e   :  { %v907_v38 = vsel %vm801_vm8, %v906_v33, %v904_v34  ;;  %v1012_v39 = vsel %vm801_vm8, %v1011_v35, %v1009_v36 }
 0x52f   :  { %1530 = vmatpush3.xpose.msk.msra.mxu0 %vm908_vm12, %v907_v38  ;;  %1535 = vmatpush3.xpose.msk.msra.mxu1 %vm908_vm12, %v1012_v39 }
 0x530   :  { %1539 = vmatprep.subr.mxu0 %v1675_v3  ;;  %1544 = vmatprep.subr.mxu1 %v1675_v3 }
 0x531   :  { %v1112_v45 = vpop.permute.xlu1 %1111  ;;  %v1217_v47 = vpop.permute.xlu0 %1216 }
 0x532   :  { %v1115_v48 = vsel %vm801_vm8, %v1114_v44, %v1112_v45  ;;  %v1220_v49 = vsel %vm801_vm8, %v1219_v46, %v1217_v47  ;;  %1532 = vmatmul.mubr.msk.f32.vlgmr.msra.gmra.mxu0 %vm908_vm12, %v1567_v42  ;;  %1537 = vmatmul.mubr.msk.f32.vlgmr.msra.gmra.mxu1 %vm908_vm12, %v1569_v43 }
 0x533   :  { %1540 = vmatpush3.xpose.msk.msra.mxu0 %vm908_vm12, %v1115_v48  ;;  %1545 = vmatpush3.xpose.msk.msra.mxu1 %vm908_vm12, %v1220_v49 }
 0x534   :  { %1541 = vmatprep.mubr.msk.f32.mxu0 %vm1676_vm2, %v1675_v3  ;;  %1546 = vmatprep.mubr.msk.f32.mxu1 %vm1676_vm2, %v1675_v3 }
 0x536   :  { %1542 = vmatmul.mubr.msk.f32.vlgmr.msra.gmra.mxu0 %vm908_vm12, %v1571_v50  ;;  %1547 = vmatmul.mubr.msk.f32.vlgmr.msra.gmra.mxu1 %vm908_vm12, %v1573_v51 }
 0x537   :  { %1597 = shalt.err (!%p1594_p9)
}
 0x538   :  { %1342 = dma.vmem_to_hbm [thread:$0]  %s1340_s19, 64, %s2129_s15, [#allocation7]   ;;  %v998_v3 = vpop.permute.xlu1 %997  ;;  %v1102_v18 = vpop.permute.xlu0 %1101  ;;  %v988_v53 = vrot.slane %v898_v52, %v1999_v56  ;;  %v1092_v54 = vrot.slane %v898_v52, %v2002_v57 }
 0x539   :  { %s1606_s5 = scalar_lea.vmem %s1330_s21, 64  ;;  %p1611_p11 = scmp.lt.s32.totalorder %s1330_s21, %s1330_s21 }
 0x53a   :  { %p1607_p10 = scmp.ne.s32.totalorder %s1330_s21, %s1606_s5  ;;  %p1612_p12 = scmp.lt.s32.totalorder %s1606_s5, %s1606_s5 }
 0x53c   :  { %p1613_p13 = por %p1612_p12, %p1611_p11 }
 0x53e   :  { %p1614_p0 = pnand %p1613_p13, %p1607_p10 }
 0x540   :  { %1617 = shalt.err (!%p1614_p0)
}
 0x541   :  { %1332 = dma.vmem_to_hbm [thread:$0]  %s1330_s21, 64, %s2128_s14, [#allocation3]   ;;  %vm990_vm13 = vcmask 15360   ;;  %v1195_v57 = vrot.slane %v898_v52, %v1194_v60  ;;  %v1300_v58 = vrot.slane %v898_v52, %v1299_v61 }
 0x542   :  { %s1683_s10 = smov [#allocation8]   ;;  %s1684_s24 = smov [#allocation9]  }
 0x543   :  { %s1349_s15 = sshll.u32 %s1683_s10, 4  ;;  %s1359_s25 = sshll.u32 %s1684_s24, 4  ;;  %s1350_s15 = int_to_ptr.vmem [resolvable:$true] %s1349_s15  ;;  %s1360_s25 = int_to_ptr.vmem [resolvable:$true] %s1359_s25 }
 0x544   :  { %s1626_s26 = scalar_lea.vmem %s1350_s15, 64  ;;  %p1631_p2 = scmp.lt.s32.totalorder %s1350_s15, %s1350_s15 }
 0x545   :  { %p1627_p1 = scmp.ne.s32.totalorder %s1350_s15, %s1626_s26  ;;  %p1632_p3 = scmp.lt.s32.totalorder %s1626_s26, %s1626_s26 }
 0x547   :  { %p1633_p4 = por %p1632_p3, %p1631_p2 }
 0x549   :  { %p1634_p5 = pnand %p1633_p4, %p1627_p1 }
 0x5f2   :  { %v981_v55 = vpop.f32.mrf.mxu0  ;;  %v1085_v56 = vpop.f32.mrf.mxu1 }
 0x5f3   :  { %1637 = shalt.err (!%p1634_p5)
}
 0x5f4   :  { %1352 = dma.vmem_to_hbm [thread:$0]  %s1350_s15, 64, %s2130_s16, [#allocation7]   ;;  %v989_v59 = vadd.f32 %v988_v53, %v981_v55  ;;  %v1000_v62 = vadd.f32 %v998_v3, %v981_v55  ;;  %v1093_v63 = vadd.f32 %v1092_v54, %v1085_v56  ;;  %v1104_v0 = vadd.f32 %v1102_v18, %v1085_v56  ;;  %v1533_v60 = vpop.f32.mrf.mxu0  ;;  %v1538_v1 = vpop.f32.mrf.mxu1 }
 0x5f5   :  { %s1646_s2 = scalar_lea.vmem %s1360_s25, 64  ;;  %p1651_p7 = scmp.lt.s32.totalorder %s1360_s25, %s1360_s25 }
 0x5f6   :  { %p1647_p6 = scmp.ne.s32.totalorder %s1360_s25, %s1646_s2  ;;  %p1652_p8 = scmp.lt.s32.totalorder %s1646_s2, %s1646_s2 }
 0x5f8   :  { %p1653_p9 = por %p1652_p8, %p1651_p7 }
 0x5fa   :  { %p1654_p10 = pnand %p1653_p9, %p1647_p6 }
 0x5fc   :  { %1657 = shalt.err (!%p1654_p10)
}
 0x5fd   :  { %1362 = dma.vmem_to_hbm [thread:$0]  %s1360_s25, 64, %s2131_s17, [#allocation10]   ;;  %v1205_v20 = vpop.permute.xlu1 %1204  ;;  %v1310_v61 = vpop.permute.xlu0 %1309  ;;  %991 = vst.msk [vmem:[%s2126_s12] sm:$0xff] %vm990_vm13, %v989_v59  ;;  %1407 = vst.msk [vmem:[%s2126_s12 + $0x8] sm:$0xff] %vm990_vm13, %v1093_v63 }
 0x5fe   :  { %s1685_s30 = smov 126   ;;  %v1188_v2 = vpop.f32.mrf.mxu0  ;;  %v1293_v4 = vpop.f32.mrf.mxu1 }
 0x5ff   :  { %1002 = vrot.lane.b32.xlu1 %v1000_v62, %s1685_s30  ;;  %1106 = vrot.lane.b32.xlu0 %v1104_v0, %s1685_s30  ;;  %v1196_v5 = vadd.f32 %v1195_v57, %v1188_v2  ;;  %v1207_v6 = vadd.f32 %v1205_v20, %v1188_v2  ;;  %v1301_v7 = vadd.f32 %v1300_v58, %v1293_v4 }
 0x600   :  { %v1312_v8 = vadd.f32 %v1310_v61, %v1293_v4  ;;  %v1543_v9 = vpop.f32.mrf.mxu0  ;;  %v1548_v10 = vpop.f32.mrf.mxu1 }
 0x601   :  { %1411 = vst.msk [vmem:[%s2126_s12 + $0x10] sm:$0xff] %vm990_vm13, %v1196_v5  ;;  %1415 = vst.msk [vmem:[%s2126_s12 + $0x18] sm:$0xff] %vm990_vm13, %v1301_v7 }
 0x603   :  { %1209 = vrot.lane.b32.xlu1 %v1207_v6, %s1685_s30  ;;  %1314 = vrot.lane.b32.xlu0 %v1312_v8, %s1685_s30 }
 0x671   :  { %v1003_v11 = vpop.permute.xlu1 %1002  ;;  %v1107_v12 = vpop.permute.xlu0 %1106 }
 0x672   :  { %1005 = vst.msk [vmem:[%s2127_s13] sm:$0xff] %vm990_vm13, %v1003_v11  ;;  %1408 = vst.msk [vmem:[%s2127_s13 + $0x8] sm:$0xff] %vm990_vm13, %v1107_v12 }
 0x675   :  { %v1210_v13 = vpop.permute.xlu1 %1209  ;;  %v1315_v15 = vpop.permute.xlu0 %1314 }
 0x676   :  { %1412 = vst.msk [vmem:[%s2127_s13 + $0x10] sm:$0xff] %vm990_vm13, %v1210_v13  ;;  %1416 = vst.msk [vmem:[%s2127_s13 + $0x18] sm:$0xff] %vm990_vm13, %v1315_v15 }
 0x677   :  { %1668 = dma.done.wait [#allocation3], 64  }
 0x678   :  { %1669 = vsyncadd [#allocation3], 4294967232 }
 0x679   :  { %1670 = dma.done.wait [#allocation7], 128  }
 0x67a   :  { %1671 = vsyncadd [#allocation7], 4294967168 }
 0x67b   :  { %1672 = dma.done.wait [#allocation10], 64  }
 0x67c   :  { %1673 = vsyncadd [#allocation10], 4294967232 }
 0x67d   :  { %1379 = vsyncpa [#allocation3], 1 }
 0x67e   :  { %1380 = vsyncpa [#allocation7], 1 }
 0x67f   :  { %1381 = vsyncpa [#allocation10], 1 }
 0x680   :  { %1382 = vsyncpa [#allocation4], 1 }

</bundles_post_ra>
